<compile_context>
chip_gen: v7x
topology: tpu7x:2x2x1
jax: 0.10.0
libtpu: 0.0.40
codegen_flags: <defaults>
</compile_context>

<pallas_src>
import functools

import jax
import jax.numpy as jnp
from jax.experimental import pallas as pl
from jax.experimental.pallas import tpu as pltpu


def _round_up(x, m):
    return (x + m - 1) // m * m


def _cdiv(a, b):
    return -(-a // b)


def _tpu_generation_info():
    """(usable physical VMEM bytes per TensorCore, TensorCores per chip), with safe fallbacks."""
    kind = ""
    try:
        kind = (getattr(jax.devices()[0], "device_kind", "") or "").lower()
    except Exception:
        kind = ""
    is_v7 = ("v7" in kind) or ("7x" in kind)
    hard_cap = (64 << 20) if is_v7 else (128 << 20)   # physical VMEM per TC: 64 MiB v7x, 128 MiB v5e/v6e
    vmem_bytes = None
    try:
        vmem_bytes = int(pltpu.get_tpu_info().vmem_capacity_bytes)
    except Exception:
        vmem_bytes = None
    if not vmem_bytes or vmem_bytes <= 0:
        vmem_bytes = hard_cap
    vmem_bytes = min(vmem_bytes, hard_cap)
    num_cores = 2 if is_v7 else 1
    return vmem_bytes, num_cores


# ----------------------------------------------------------------------------------------
# Shared softmax / KL epilogue (runs on the fully accumulated W).
# ----------------------------------------------------------------------------------------
def _softmax_kl_epilogue(W, y_col, y_row, *, walker_weight, visit_weight):
    ns, nt = W.shape

    # Column softmax A (A[s,t] = softmax_s W[:,t]); Pts = A^T is never materialized.
    a = jnp.exp(W - jnp.max(W, axis=0, keepdims=True))
    a = a * pl.reciprocal(jnp.sum(a, axis=0, keepdims=True), approx=True)

    # Row softmax Pst; after this W is dead (bounded live set for v7x's 64 MiB VMEM).
    pst = jnp.exp(W - jnp.max(W, axis=1, keepdims=True))
    pst = pst * pl.reciprocal(jnp.sum(pst, axis=1, keepdims=True), approx=True)

    # Visit loss: KL(p_visit || Pt), reduction='sum', divided by 1.  Pt computed before Psts
    # so only its (1, Nt) row stays live.
    pt = jnp.mean(pst, axis=0, keepdims=True)
    p_visit = jnp.float32(1.0 / nt)
    l_visit = jnp.sum(p_visit * (jnp.log(p_visit) - jnp.log(jnp.float32(1e-8) + pt)))

    # Psts = Pst @ Pts = Pst @ A^T  -> contract the Nt axis of both (no transpose).
    psts = jax.lax.dot_general(
        pst, a,
        dimension_numbers=(((1,), (1,)), ((), ())),
        preferred_element_type=jnp.float32,
    )                                                       # (Ns, Ns)

    # Walker loss: KL(p_target || Psts), reduction='sum', divided by Ns.
    eq = (y_col == y_row).astype(jnp.float32)               # (Ns, Ns)
    counts = jnp.sum(eq, axis=1, keepdims=True)             # (Ns, 1), >= 1
    # Exact divide (review): keeps p_target rows summing to 1 consistent with the exact
    # closed-form entropy term below.  One-shot (Ns,1) op, negligible cost.
    p_target = eq / counts
    # Rows of p_target are uniform over matching labels =>
    #   sum_ij p_target * log(p_target) = -sum_i log(counts_i)
    entropy_term = -jnp.sum(jnp.log(counts))
    cross_term = jnp.sum(p_target * jnp.log(jnp.float32(1e-8) + psts))
    l_walker = (entropy_term - cross_term) / jnp.float32(ns)

    return (jnp.float32(visit_weight) * l_visit + jnp.float32(walker_weight) * l_walker)


# ----------------------------------------------------------------------------------------
# Path A: single fused kernel (D-tiled matmul + epilogue at the last grid step).
# ----------------------------------------------------------------------------------------
def _fused_kernel(xs_ref, xt_ref, ycol_ref, yrow_ref, out_ref, w_acc_ref,
                  *, walker_weight, visit_weight):
    k = pl.program_id(0)

    @pl.when(k == 0)
    def _init():
        w_acc_ref[...] = jnp.zeros_like(w_acc_ref)

    # Partial W += xs_tile @ xt_tile^T (native-dtype MXU matmul, f32 accumulate).
    w_acc_ref[...] += jax.lax.dot_general(
        xs_ref[...], xt_ref[...],
        dimension_numbers=(((1,), (1,)), ((), ())),
        preferred_element_type=jnp.float32,
    )

    @pl.when(k == pl.num_programs(0) - 1)
    def _epilogue():
        out_ref[0, 0] = _softmax_kl_epilogue(
            w_acc_ref[...], ycol_ref[...], yrow_ref[...],
            walker_weight=walker_weight, visit_weight=visit_weight)


# ----------------------------------------------------------------------------------------
# Path B: split-D partial-W matmul (parallel axis -> both v7x TensorCores) + tiny epilogue.
# ----------------------------------------------------------------------------------------
def _w_partial_kernel(xs_ref, xt_ref, w_ref):
    @pl.when(pl.program_id(1) == 0)
    def _init():
        w_ref[...] = jnp.zeros_like(w_ref)

    w_ref[...] += jax.lax.dot_general(
        xs_ref[...], xt_ref[...],
        dimension_numbers=(((1,), (1,)), ((), ())),
        preferred_element_type=jnp.float32,
    )


def _epilogue_kernel(w_parts_ref, ycol_ref, yrow_ref, out_ref,
                     *, walker_weight, visit_weight):
    n_split = w_parts_ref.shape[0]
    W = w_parts_ref[0]
    for s in range(1, n_split):          # static tiny loop (n_split == number of cores)
        W = W + w_parts_ref[s]
    out_ref[0, 0] = _softmax_kl_epilogue(
        W, ycol_ref[...], yrow_ref[...],
        walker_weight=walker_weight, visit_weight=visit_weight)


# ----------------------------------------------------------------------------------------
# Wrapper
# ----------------------------------------------------------------------------------------
def associative_loss(xs, xt, y, walker_weight=1.0, visit_weight=1.0, *,
                     force_num_splits=None):
    """xs: (Ns, K, ...), xt: (Nt, K, ...), y: (Ns,) integer labels -> scalar f32 loss."""
    Ns = xs.shape[0]
    Nt = xt.shape[0]
    xs_flat = xs.reshape(Ns, -1)          # keep native dtype (bf16 streams at half bytes)
    xt_flat = xt.reshape(Nt, -1)
    assert xs_flat.shape[1] == xt_flat.shape[1], "feature dims must match"
    D = xs_flat.shape[1]
    itemsize = jnp.dtype(xs_flat.dtype).itemsize

    vmem_capacity, num_cores = _tpu_generation_info()
    # Per-generation scoped-VMEM limit: ~0.8x physical leaves headroom for compiler
    # internals/semaphores (=> ~102 MiB on v5e/v6e, ~51 MiB on v7x).
    vmem_limit = int(0.8 * vmem_capacity)

    # ---- tile_d from the VMEM budget (not from divisibility of D) ----
    ns_sub = _round_up(Ns, 8)
    nt_sub = _round_up(Nt, 8)
    nt_lane = _round_up(Nt, 128)
    ns_lane = _round_up(Ns, 128)
    # Fixed f32 footprint: W accumulator + bounded epilogue live set (~A,Pst,Psts,eq,p_target).
    fixed = 4 * (5 * ns_sub * nt_lane + 3 * ns_sub * ns_lane) + (2 << 20)
    per_col = 2 * (ns_sub + nt_sub) * itemsize          # double-buffered xs/xt tile columns
    tile_cap = (max(vmem_limit - fixed, per_col * 128) // per_col) // 128 * 128
    tile_cap = int(max(128, min(2048, tile_cap)))        # >=512 typical; diminishing returns >2048

    d128 = _round_up(D, 128)
    req_splits = int(force_num_splits) if force_num_splits is not None else num_cores
    num_splits = max(1, min(req_splits, d128 // 128))    # need >=1 tile per split
    n_tiles = _round_up(max(num_splits, _cdiv(d128, tile_cap)), num_splits)
    tile_d = _round_up(_cdiv(d128, n_tiles), 128)        # always <= tile_cap
    d_pad = n_tiles * tile_d

    if d_pad != D:                                       # zero cols don't change xs @ xt^T
        xs_flat = jnp.pad(xs_flat, ((0, 0), (0, d_pad - D)))
        xt_flat = jnp.pad(xt_flat, ((0, 0), (0, d_pad - D)))

    y_col = y.reshape(Ns, 1).astype(jnp.int32)
    y_row = y.reshape(1, Ns).astype(jnp.int32)

    if num_splits == 1:
        # ---- Path A: single fused call (1-TC chips, or a single D tile). ----
        kernel = functools.partial(
            _fused_kernel,
            walker_weight=float(walker_weight), visit_weight=float(visit_weight))
        out = pl.pallas_call(
            kernel,
            out_shape=jax.ShapeDtypeStruct((1, 1), jnp.float32),
            grid_spec=pltpu.PrefetchScalarGridSpec(
                num_scalar_prefetch=0,
                grid=(n_tiles,),
                in_specs=[
                    pl.BlockSpec((Ns, tile_d), lambda k: (0, k)),   # xs tile
                    pl.BlockSpec((Nt, tile_d), lambda k: (0, k)),   # xt tile
                    pl.BlockSpec((Ns, 1), lambda k: (0, 0)),        # labels (column)
                    pl.BlockSpec((1, Ns), lambda k: (0, 0)),        # labels (row)
                ],
                out_specs=pl.BlockSpec((1, 1), lambda k: (0, 0),
                                       memory_space=pltpu.MemorySpace.SMEM),
                scratch_shapes=[pltpu.VMEM((Ns, Nt), jnp.float32)],  # W accumulator
            ),
            compiler_params=pltpu.CompilerParams(
                dimension_semantics=("arbitrary",),
                vmem_limit_bytes=vmem_limit,
            ),
        )(xs_flat, xt_flat, y_col, y_row)
        return out[0, 0]

    # ---- Path B: split the D reduction across cores, then sum partials + epilogue. ----
    kt = n_tiles // num_splits
    w_parts = pl.pallas_call(
        _w_partial_kernel,
        out_shape=jax.ShapeDtypeStruct((num_splits, Ns, Nt), jnp.float32),
        grid_spec=pltpu.PrefetchScalarGridSpec(
            num_scalar_prefetch=0,
            grid=(num_splits, kt),
            in_specs=[
                pl.BlockSpec((Ns, tile_d), lambda c, k: (0, c * kt + k)),
                pl.BlockSpec((Nt, tile_d), lambda c, k: (0, c * kt + k)),
            ],
            out_specs=pl.BlockSpec((None, Ns, Nt), lambda c, k: (c, 0, 0)),
        ),
        compiler_params=pltpu.CompilerParams(
            dimension_semantics=("parallel", "arbitrary"),
            vmem_limit_bytes=vmem_limit,
        ),
    )(xs_flat, xt_flat)

    epi = functools.partial(
        _epilogue_kernel,
        walker_weight=float(walker_weight), visit_weight=float(visit_weight))
    out = pl.pallas_call(
        epi,
        out_shape=jax.ShapeDtypeStruct((1, 1), jnp.float32),
        grid_spec=pltpu.PrefetchScalarGridSpec(
            num_scalar_prefetch=0,
            grid=(1,),
            in_specs=[
                pl.BlockSpec((num_splits, Ns, Nt), lambda i: (0, 0, 0)),
                pl.BlockSpec((Ns, 1), lambda i: (0, 0)),
                pl.BlockSpec((1, Ns), lambda i: (0, 0)),
            ],
            out_specs=pl.BlockSpec((1, 1), lambda i: (0, 0),
                                   memory_space=pltpu.MemorySpace.SMEM),
        ),
        compiler_params=pltpu.CompilerParams(
            dimension_semantics=("arbitrary",),
            vmem_limit_bytes=vmem_limit,
        ),
    )(w_parts, y_col, y_row)
    return out[0, 0]


# ----------------------------------------------------------------------------------------
# Pure-JAX reference (mirrors the PyTorch AssociativeLoss forward) for validation.
# ----------------------------------------------------------------------------------------
def _reference_loss(xs, xt, y, walker_weight=1.0, visit_weight=1.0):
    Ns, Nt = xs.shape[0], xt.shape[0]
    xs_f = xs.reshape(Ns, -1).astype(jnp.float32)
    xt_f = xt.reshape(Nt, -1).astype(jnp.float32)
    W = xs_f @ xt_f.T
    pst = jax.nn.softmax(W, axis=1)
    pts = jax.nn.softmax(W.T, axis=1)
    psts = pst @ pts
    pt = jnp.mean(pst, axis=0, keepdims=True)
    p_visit = 1.0 / Nt
    l_visit = jnp.sum(p_visit * (jnp.log(p_visit) - jnp.log(1e-08 + pt)))
    eq = (y[:, None] == y[None, :]).astype(jnp.float32)
    p_target = eq / jnp.sum(eq, axis=1, keepdims=True)
    safe_p = jnp.where(p_target > 0, p_target, 1.0)
    l_walker = jnp.sum(p_target * (jnp.log(safe_p) - jnp.log(1e-08 + psts))) / Ns
    return visit_weight * l_visit + walker_weight * l_walker


if __name__ == "__main__":
    key = jax.random.PRNGKey(0)
    k1, k2, k3, k4, k5, k6 = jax.random.split(key, 6)

    # Test 1: small shapes -> single D tile -> fused matmul + epilogue path.
    Ns, Nt, K, H, W = 8, 8, 4, 4, 4
    xs = jax.random.normal(k1, (Ns, K, H, W), dtype=jnp.float32)
    xt = jax.random.normal(k2, (Nt, K, H, W), dtype=jnp.float32)
    y = jax.random.randint(k3, (Ns,), 0, 2, dtype=jnp.int32)
    loss = jax.block_until_ready(associative_loss(xs, xt, y, 1.0, 1.0))
    ref = jax.block_until_ready(_reference_loss(xs, xt, y, 1.0, 1.0))
    assert jnp.isfinite(loss), f"non-finite loss: {loss}"
    assert jnp.allclose(loss, ref, rtol=5e-2, atol=5e-2), f"mismatch: {loss} vs {ref}"

    # Test 2: force the split-D (megacore) path: >=2 D tiles, 2 splits.  Correct on any
    # chip; uses both TensorCores on v7x.
    Ns2, Nt2, K2, H2, W2 = 16, 8, 6, 8, 8      # D = 384 -> 2 splits x 1 tile of 256
    xs2 = jax.random.normal(k4, (Ns2, K2, H2, W2), dtype=jnp.float32)
    xt2 = jax.random.normal(k5, (Nt2, K2, H2, W2), dtype=jnp.float32)
    y2 = jax.random.randint(k6, (Ns2,), 0, 3, dtype=jnp.int32)
    loss2 = jax.block_until_ready(
        associative_loss(xs2, xt2, y2, 0.7, 1.3, force_num_splits=2))
    ref2 = jax.block_until_ready(_reference_loss(xs2, xt2, y2, 0.7, 1.3))
    assert jnp.isfinite(loss2), f"non-finite loss: {loss2}"
    assert jnp.allclose(loss2, ref2, rtol=5e-2, atol=5e-2), f"mismatch: {loss2} vs {ref2}"

    print("KERNEL_OK")
</pallas_src>

<mosaic_0001>
module attributes {stable_mosaic.version = 11 : i64} {
  func.func @_fused_kernel(%arg0: i32, %arg1: memref<8x128xf32, #tpu.memory_space<vmem>>, %arg2: memref<8x128xf32, #tpu.memory_space<vmem>>, %arg3: memref<8x1xi32, #tpu.memory_space<vmem>>, %arg4: memref<1x8xi32, #tpu.memory_space<vmem>>, %arg5: memref<1x1xf32, #tpu.memory_space<smem>>, %arg6: memref<8x8xf32, #tpu.memory_space<vmem>>) attributes {dimension_semantics = [#tpu.dimension_semantics<arbitrary>], iteration_bounds = array<i64: 1>, scalar_prefetch = 0 : i64, scratch_operands = 1 : i64, tpu.core_type = #tpu.core_type<tc>, window_params = [{transform_indices = @transform_0, window_bounds = array<i64: 8, 128>}, {transform_indices = @transform_1, window_bounds = array<i64: 8, 128>}, {pipeline_mode = #tpu.pipeline_mode<synchronous>, transform_indices = @transform_2, window_bounds = array<i64: 8, 1>}, {pipeline_mode = #tpu.pipeline_mode<synchronous>, transform_indices = @transform_3, window_bounds = array<i64: 1, 8>}, {transform_indices = @transform_4, window_bounds = array<i64: 1, 1>}]} {
    %c0_i32 = arith.constant 0 : i32
    %0 = arith.cmpi eq, %arg0, %c0_i32 : i32
    %1 = arith.extui %0 : i1 to i32
    %c0_i32_0 = arith.constant 0 : i32
    %2 = arith.cmpi ne, %1, %c0_i32_0 : i32
    scf.if %2 {
      %cst_10 = arith.constant 0.000000e+00 : f32
      %12 = vector.broadcast %cst_10 : f32 to vector<8x8xf32>
      %c0_11 = arith.constant 0 : index
      %c0_12 = arith.constant 0 : index
      %13 = vector.load %arg6[%c0_11, %c0_12] : memref<8x8xf32, #tpu.memory_space<vmem>>, vector<8x8xf32>
      tpu.vector_store %arg6[%c0_11, %c0_12], %12 {strides = array<i32>} : memref<8x8xf32, #tpu.memory_space<vmem>>, vector<8x8xf32>,
    } else {
    }
    %c0 = arith.constant 0 : index
    %c0_1 = arith.constant 0 : index
    %3 = vector.load %arg6[%c0, %c0_1] : memref<8x8xf32, #tpu.memory_space<vmem>>, vector<8x8xf32>
    %c0_2 = arith.constant 0 : index
    %c0_3 = arith.constant 0 : index
    %4 = vector.load %arg1[%c0_2, %c0_3] : memref<8x128xf32, #tpu.memory_space<vmem>>, vector<8x128xf32>
    %c0_4 = arith.constant 0 : index
    %c0_5 = arith.constant 0 : index
    %5 = vector.load %arg2[%c0_4, %c0_5] : memref<8x128xf32, #tpu.memory_space<vmem>>, vector<8x128xf32>
    %cst = arith.constant dense<0.000000e+00> : vector<8x8xf32>
    %6 = tpu.matmul %4, %5, %cst {dimension_numbers = #tpu.dot_dimension_numbers<[1], [1], [0], [0], [0, 0, 1, 0], [], []>} : vector<8x128xf32>, vector<8x128xf32>, vector<8x8xf32> -> vector<8x8xf32>
    %7 = arith.addf %3, %6 : vector<8x8xf32>
    %c0_6 = arith.constant 0 : index
    %c0_7 = arith.constant 0 : index
    %8 = vector.load %arg6[%c0_6, %c0_7] : memref<8x8xf32, #tpu.memory_space<vmem>>, vector<8x8xf32>
    tpu.vector_store %arg6[%c0_6, %c0_7], %7 {strides = array<i32>} : memref<8x8xf32, #tpu.memory_space<vmem>>, vector<8x8xf32>,
    %c0_i32_8 = arith.constant 0 : i32
    %9 = arith.cmpi eq, %arg0, %c0_i32_8 : i32
    %10 = arith.extui %9 : i1 to i32
    %c0_i32_9 = arith.constant 0 : i32
    %11 = arith.cmpi ne, %10, %c0_i32_9 : i32
    scf.if %11 {
      %c0_10 = arith.constant 0 : index
      %c0_11 = arith.constant 0 : index
      %12 = vector.load %arg6[%c0_10, %c0_11] : memref<8x8xf32, #tpu.memory_space<vmem>>, vector<8x8xf32>
      %c0_12 = arith.constant 0 : index
      %c0_13 = arith.constant 0 : index
      %13 = vector.load %arg3[%c0_12, %c0_13] : memref<8x1xi32, #tpu.memory_space<vmem>>, vector<8x1xi32>
      %c0_14 = arith.constant 0 : index
      %c0_15 = arith.constant 0 : index
      %14 = vector.load %arg4[%c0_14, %c0_15] : memref<1x8xi32, #tpu.memory_space<vmem>>, vector<1x8xi32>
      %cst_16 = arith.constant dense<0xFF800000> : vector<8xf32>
      %15 = vector.multi_reduction <maximumf>, %12, %cst_16 [0] : vector<8x8xf32> to vector<8xf32>
      %16 = vector.shape_cast %15 : vector<8xf32> to vector<1x8xf32>
      %17 = vector.broadcast %16 : vector<1x8xf32> to vector<8x8xf32>
      %18 = arith.subf %12, %17 : vector<8x8xf32>
      %19 = math.exp %18 : vector<8x8xf32>
      %cst_17 = arith.constant dense<0.000000e+00> : vector<8xf32>
      %20 = vector.multi_reduction <add>, %19, %cst_17 [0] : vector<8x8xf32> to vector<8xf32>
      %21 = vector.shape_cast %20 : vector<8xf32> to vector<1x8xf32>
      %22 = tpu.reciprocal %21 {approx = true} : vector<1x8xf32> -> vector<1x8xf32>
      %23 = vector.broadcast %22 : vector<1x8xf32> to vector<8x8xf32>
      %24 = arith.mulf %19, %23 : vector<8x8xf32>
      %cst_18 = arith.constant dense<0xFF800000> : vector<8xf32>
      %25 = vector.multi_reduction <maximumf>, %12, %cst_18 [1] : vector<8x8xf32> to vector<8xf32>
      %26 = vector.shape_cast %25 : vector<8xf32> to vector<8x1xf32>
      %27 = vector.broadcast %26 : vector<8x1xf32> to vector<8x8xf32>
      %28 = arith.subf %12, %27 : vector<8x8xf32>
      %29 = math.exp %28 : vector<8x8xf32>
      %cst_19 = arith.constant dense<0.000000e+00> : vector<8xf32>
      %30 = vector.multi_reduction <add>, %29, %cst_19 [1] : vector<8x8xf32> to vector<8xf32>
      %31 = vector.shape_cast %30 : vector<8xf32> to vector<8x1xf32>
      %32 = tpu.reciprocal %31 {approx = true} : vector<8x1xf32> -> vector<8x1xf32>
      %33 = vector.broadcast %32 : vector<8x1xf32> to vector<8x8xf32>
      %34 = arith.mulf %29, %33 : vector<8x8xf32>
      %cst_20 = arith.constant dense<0.000000e+00> : vector<8xf32>
      %35 = vector.multi_reduction <add>, %34, %cst_20 [0] : vector<8x8xf32> to vector<8xf32>
      %36 = vector.shape_cast %35 : vector<8xf32> to vector<1x8xf32>
      %cst_21 = arith.constant 8.000000e+00 : f32
      %37 = vector.broadcast %cst_21 : f32 to vector<1x8xf32>
      %38 = arith.divf %36, %37 : vector<1x8xf32>
      %cst_22 = arith.constant 1.250000e-01 : f32
      %39 = math.log %cst_22 : f32
      %cst_23 = arith.constant 9.99999993E-9 : f32
      %40 = vector.broadcast %cst_23 : f32 to vector<1x8xf32>
      %41 = arith.addf %40, %38 : vector<1x8xf32>
      %42 = math.log %41 : vector<1x8xf32>
      %43 = vector.broadcast %39 : f32 to vector<1x8xf32>
      %44 = arith.subf %43, %42 : vector<1x8xf32>
      %cst_24 = arith.constant 1.250000e-01 : f32
      %45 = vector.broadcast %cst_24 : f32 to vector<1x8xf32>
      %46 = arith.mulf %45, %44 : vector<1x8xf32>
      %47 = vector.shape_cast %46 : vector<1x8xf32> to vector<1x1x8xf32>
      %cst_25 = arith.constant dense<0.000000e+00> : vector<1xf32>
      %48 = vector.multi_reduction <add>, %47, %cst_25 [1, 2] : vector<1x1x8xf32> to vector<1xf32>
      %49 = vector.shape_cast %48 : vector<1xf32> to vector<1x1x1xf32>
      %50 = vector.extract %49[0, 0, 0] : f32 from vector<1x1x1xf32>
      %cst_26 = arith.constant dense<0.000000e+00> : vector<8x8xf32>
      %51 = tpu.matmul %34, %24, %cst_26 {dimension_numbers = #tpu.dot_dimension_numbers<[1], [1], [0], [0], [0, 0, 1, 0], [], []>} : vector<8x8xf32>, vector<8x8xf32>, vector<8x8xf32> -> vector<8x8xf32>
      %52 = vector.broadcast %13 : vector<8x1xi32> to vector<8x8xi32>
      %53 = vector.broadcast %14 : vector<1x8xi32> to vector<8x8xi32>
      %54 = arith.cmpi eq, %52, %53 : vector<8x8xi32>
      %55 = arith.extui %54 : vector<8x8xi1> to vector<8x8xi32>
      %56 = arith.sitofp %55 : vector<8x8xi32> to vector<8x8xf32>
      %cst_27 = arith.constant dense<0.000000e+00> : vector<8xf32>
      %57 = vector.multi_reduction <add>, %56, %cst_27 [1] : vector<8x8xf32> to vector<8xf32>
      %58 = vector.shape_cast %57 : vector<8xf32> to vector<8x1xf32>
      %59 = vector.broadcast %58 : vector<8x1xf32> to vector<8x8xf32>
      %60 = arith.divf %56, %59 : vector<8x8xf32>
      %61 = math.log %58 : vector<8x1xf32>
      %62 = vector.shape_cast %61 : vector<8x1xf32> to vector<1x8x1xf32>
      %cst_28 = arith.constant dense<0.000000e+00> : vector<1xf32>
      %63 = vector.multi_reduction <add>, %62, %cst_28 [1, 2] : vector<1x8x1xf32> to vector<1xf32>
      %64 = vector.shape_cast %63 : vector<1xf32> to vector<1x1x1xf32>
      %65 = vector.extract %64[0, 0, 0] : f32 from vector<1x1x1xf32>
      %cst_29 = arith.constant 0.000000e+00 : f32
      %66 = arith.subf %cst_29, %65 : f32
      %cst_30 = arith.constant 9.99999993E-9 : f32
      %67 = vector.broadcast %cst_30 : f32 to vector<8x8xf32>
      %68 = arith.addf %67, %51 : vector<8x8xf32>
      %69 = math.log %68 : vector<8x8xf32>
      %70 = arith.mulf %60, %69 : vector<8x8xf32>
      %71 = vector.shape_cast %70 : vector<8x8xf32> to vector<1x8x8xf32>
      %cst_31 = arith.constant dense<0.000000e+00> : vector<1xf32>
      %72 = vector.multi_reduction <add>, %71, %cst_31 [1, 2] : vector<1x8x8xf32> to vector<1xf32>
      %73 = vector.shape_cast %72 : vector<1xf32> to vector<1x1x1xf32>
      %74 = vector.extract %73[0, 0, 0] : f32 from vector<1x1x1xf32>
      %75 = arith.subf %66, %74 : f32
      %cst_32 = arith.constant 8.000000e+00 : f32
      %76 = arith.divf %75, %cst_32 : f32
      %cst_33 = arith.constant 1.000000e+00 : f32
      %77 = arith.mulf %cst_33, %50 : f32
      %cst_34 = arith.constant 1.000000e+00 : f32
      %78 = arith.mulf %cst_34, %76 : f32
      %79 = arith.addf %77, %78 : f32
      %c0_35 = arith.constant 0 : index
      %c0_36 = arith.constant 0 : index
      %80 = memref.load %arg5[%c0_35, %c0_36] : memref<1x1xf32, #tpu.memory_space<smem>>
      memref.store %79, %arg5[%c0_35, %c0_36] : memref<1x1xf32, #tpu.memory_space<smem>>
    } else {
    }
    return
  }
  func.func @transform_0(%arg0: i32) -> (i32, i32) {
    %c0_i32 = arith.constant 0 : i32
    %c0_i32_0 = arith.constant 0 : i32
    return %c0_i32, %arg0 : i32, i32
  }
  func.func @transform_1(%arg0: i32) -> (i32, i32) {
    %c0_i32 = arith.constant 0 : i32
    %c0_i32_0 = arith.constant 0 : i32
    return %c0_i32, %arg0 : i32, i32
  }
  func.func @transform_2(%arg0: i32) -> (i32, i32) {
    %c0_i32 = arith.constant 0 : i32
    %c0_i32_0 = arith.constant 0 : i32
    %c0_i32_1 = arith.constant 0 : i32
    return %c0_i32, %c0_i32_0 : i32, i32
  }
  func.func @transform_3(%arg0: i32) -> (i32, i32) {
    %c0_i32 = arith.constant 0 : i32
    %c0_i32_0 = arith.constant 0 : i32
    %c0_i32_1 = arith.constant 0 : i32
    return %c0_i32, %c0_i32_0 : i32, i32
  }
  func.func @transform_4(%arg0: i32) -> (i32, i32) {
    %c0_i32 = arith.constant 0 : i32
    %c0_i32_0 = arith.constant 0 : i32
    %c0_i32_1 = arith.constant 0 : i32
    return %c0_i32, %c0_i32_0 : i32, i32
  }
}

</mosaic_0001>

<bundles_post_ra>
// kernel: tpu_custom_call.1
= control target key start
LH: loop header
LB: loop body
LE: loop exit
PB: predicated region body
PF: predicated region fallthrough
CT: control target
= control target key end

     0   :  { %9 = vsyncpa [#allocation4], 0  ;;  %s611_s0 = inlined_call_operand.hbm [shape: f32[8,128], index: 0, kind: input, shape index: {}]   ;;  %s612_s1 = inlined_call_operand.hbm [shape: f32[8,128], index: 1, kind: input, shape index: {}]   ;;  %s613_s2 = inlined_call_operand.hbm [shape: s32[8,1], index: 2, kind: input, shape index: {}]   ;;  %s614_s3 = inlined_call_operand.hbm [shape: s32[1,8], index: 3, kind: input, shape index: {}]   ;;  %s615_s4 = inlined_call_operand.hbm [shape: f32[1,1], index: 4, kind: output, shape index: {}]  }
   0x1   :  { %10 = vsyncpa [#allocation7], 0 }
   0x2   :  { %11 = vsyncpa [#allocation10], 0 }
   0x3   :  { %12 = vsyncpa [#allocation5], 0  ;;  %s504_s15 = smov [#allocation6]   ;;  %s505_s17 = smov [#allocation3]  }
   0x4   :  { %s29_s16 = sshll.u32 %s504_s15, 4  ;;  %s19_s18 = sshll.u32 %s505_s17, 4  ;;  %s30_s16 = int_to_ptr.vmem [resolvable:$true] %s29_s16  ;;  %s20_s18 = int_to_ptr.vmem [resolvable:$true] %s19_s18 }
   0x5   :  { %s398_s21 = scalar_lea.hbm %s612_s1, 128 }
   0x6   :  { %p399_p0 = scmp.ne.s32.totalorder %s612_s1, %s398_s21  ;;  %p402_p1 = scmp.lt.u32.totalorder %s398_s21, %s612_s1 }
   0x8   :  { %p404_p2 = pnand %p402_p1, %p399_p0 }
   0xa   :  { %407 = shalt.err (!%p404_p2)
}
   0xb   :  { %s408_s26 = scalar_lea.vmem %s30_s16, 128  ;;  %p413_p4 = scmp.lt.s32.totalorder %s30_s16, %s30_s16 }
   0xc   :  { %p409_p3 = scmp.ne.s32.totalorder %s30_s16, %s408_s26  ;;  %p414_p5 = scmp.lt.s32.totalorder %s408_s26, %s408_s26 }
   0xe   :  { %p415_p6 = por %p414_p5, %p413_p4 }
  0x10   :  { %p416_p7 = pnand %p415_p6, %p409_p3 }
  0x12   :  { %419 = shalt.err (!%p416_p7)
}
  0x13   :  { %32 = dma.hbm_to_vmem [thread:$0]  %s612_s1, 128, %s30_s16, [#allocation7]  }
  0x14   :  { %s420_s5 = scalar_lea.hbm %s611_s0, 128 }
  0x15   :  { %p421_p8 = scmp.ne.s32.totalorder %s611_s0, %s420_s5  ;;  %p424_p9 = scmp.lt.u32.totalorder %s420_s5, %s611_s0 }
  0x17   :  { %p426_p10 = pnand %p424_p9, %p421_p8 }
  0x19   :  { %429 = shalt.err (!%p426_p10)
}
  0x1a   :  { %s430_s10 = scalar_lea.vmem %s20_s18, 128  ;;  %p435_p12 = scmp.lt.s32.totalorder %s20_s18, %s20_s18 }
  0x1b   :  { %p431_p11 = scmp.ne.s32.totalorder %s20_s18, %s430_s10  ;;  %p436_p13 = scmp.lt.s32.totalorder %s430_s10, %s430_s10 }
  0x1d   :  { %p437_p0 = por %p436_p13, %p435_p12 }
  0x1f   :  { %p438_p1 = pnand %p437_p0, %p431_p11 }
  0x21   :  { %441 = shalt.err (!%p438_p1)
}
  0x22   :  { %22 = dma.hbm_to_vmem [thread:$0]  %s611_s0, 128, %s20_s18, [#allocation4]  }
  0x23   :  { %s506_s12 = smov [#allocation8]   ;;  %s507_s14 = smov [#allocation9]  }
  0x24   :  { %s39_s13 = sshll.u32 %s506_s12, 4  ;;  %s49_s15 = sshll.u32 %s507_s14, 4  ;;  %s40_s13 = int_to_ptr.vmem [resolvable:$true] %s39_s13  ;;  %s50_s15 = int_to_ptr.vmem [resolvable:$true] %s49_s15 }
  0x25   :  { %s442_s19 = scalar_lea.hbm %s613_s2, 128 }
  0x26   :  { %p443_p2 = scmp.ne.s32.totalorder %s613_s2, %s442_s19  ;;  %p446_p3 = scmp.lt.u32.totalorder %s442_s19, %s613_s2 }
  0x28   :  { %p448_p4 = pnand %p446_p3, %p443_p2 }
  0x2a   :  { %451 = shalt.err (!%p448_p4)
}
  0x2b   :  { %s452_s0 = scalar_lea.vmem %s40_s13, 128  ;;  %p457_p6 = scmp.lt.s32.totalorder %s40_s13, %s40_s13 }
  0x2c   :  { %p453_p5 = scmp.ne.s32.totalorder %s40_s13, %s452_s0  ;;  %p458_p7 = scmp.lt.s32.totalorder %s452_s0, %s452_s0 }
  0x2e   :  { %p459_p8 = por %p458_p7, %p457_p6 }
  0x30   :  { %p460_p9 = pnand %p459_p8, %p453_p5 }
  0x32   :  { %463 = shalt.err (!%p460_p9)
}
  0x33   :  { %42 = dma.hbm_to_vmem [thread:$0]  %s613_s2, 128, %s40_s13, [#allocation7]  }
  0x34   :  { %s464_s27 = scalar_lea.hbm %s614_s3, 16 }
  0x35   :  { %p465_p10 = scmp.ne.s32.totalorder %s614_s3, %s464_s27  ;;  %p468_p11 = scmp.lt.u32.totalorder %s464_s27, %s614_s3 }
  0x37   :  { %p470_p12 = pnand %p468_p11, %p465_p10 }
  0x39   :  { %473 = shalt.err (!%p470_p12)
}
  0x3a   :  { %s474_s6 = scalar_lea.vmem %s50_s15, 16  ;;  %s478_s7 = scalar_lea.vmem %s50_s15, 32 }
  0x3b   :  { %p475_p13 = scmp.ne.s32.totalorder %s50_s15, %s474_s6  ;;  %p479_p0 = scmp.lt.s32.totalorder %s50_s15, %s50_s15 }
  0x3c   :  { %p480_p1 = scmp.lt.s32.totalorder %s478_s7, %s474_s6 }
  0x3e   :  { %p481_p2 = por %p480_p1, %p479_p0 }
  0x40   :  { %p482_p3 = pnand %p481_p2, %p475_p13 }
  0x42   :  { %485 = shalt.err (!%p482_p3)
}
  0x43   :  { %52 = dma.hbm_to_vmem [thread:$0]  %s614_s3, 16, %s50_s15, [#allocation10]  }
  0x44   :  { %496 = dma.done.wait [#allocation4], 128  }
  0x45   :  { %497 = vsyncadd [#allocation4], 4294967168 }
  0x46   :  { %498 = dma.done.wait [#allocation7], 256  }
  0x47   :  { %499 = vsyncadd [#allocation7], 4294967040 }
  0x48   :  { %500 = dma.done.wait [#allocation10], 16  }
  0x49   :  { %501 = vsyncadd [#allocation10], 4294967280  ;;  %vm69_vm0 = vcmask 64512   ;;  %v508_v0 = vmov 0.0   ;;  %vm509_vm1 = vmmov 0   ;;  %v73_v1 = vld [vmem:[#allocation6] sm:$0xff] }
  0x4a   :  { %356 = vmatprep.subr.mxu0 %v508_v0  ;;  %358 = vmatprep.mubr.msk.f32.mxu0 %vm509_vm1, %v508_v0  ;;  %70 = vst.msk [vmem:[#allocation2] sm:$0xff] %vm69_vm0, %v508_v0  ;;  %v72_v2 = vld [vmem:[#allocation3] sm:$0xff]  ;;  %v151_v3 = vld [vmem:[#allocation8] sm:$0xff]  ;;  %v510_v4 = vmov 0   ;;  %v348_v29 = vld [vmem:[#allocation9] ss:$0 sm:$0xff] }
  0x4b   :  { %361 = vmatprep.subr.mxu1 %v508_v0  ;;  %363 = vmatprep.mubr.msk.f32.mxu1 %vm509_vm1, %v508_v0  ;;  %vm224_vm3 = vcmask 7168   ;;  %vm196_vm4 = vcmask 57344   ;;  %s486_s16 = scalar_lea.hbm %s615_s4, 16 }
  0x4c   :  { %357 = vmatpush3.xpose.msra.mxu0 %v73_v1  ;;  %380 = vset.pattern.permute.xlu1 %v510_v4  ;;  %p487_p4 = scmp.ne.s32.totalorder %s615_s4, %s486_s16  ;;  %p490_p5 = scmp.lt.u32.totalorder %s486_s16, %s615_s4 }
  0x4d   :  { %381 = vset.pattern.permute.xlu0 %v510_v4  ;;  %208 = vperm.xlu1 %380, %v151_v3  }
  0x4e   :  { %p492_p6 = pnand %p490_p5, %p487_p4 }
  0x4f   :  { %359 = vmatmul.mubr.f32.vlgmr.msra.gmra.mrb[0].mxu0 %v72_v2 }
  0x51   :  { %v71_v5 = vld [vmem:[#allocation2] sm:$0xff] }
  0xcc   :  { %v209_v30 = vpop.permute.xlu1 %208 }
  0xcd   :  { %vm214_vm2 = vcmp.eq.s32.totalorder %v209_v30, %v348_v29 }
  0xce   :  { %v590_v31 = vsel %vm214_vm2, 1.0, %v508_v0 }
  0xcf   :  { %v217_v32 = vsel %vm69_vm0, %v590_v31, 0.0 }
  0xd0   :  { %218 = vadd.xlane.f32.xlu1 %v217_v32 }
 0x122   :  { %v140_v6 = vpop.f32.mrb[0].mxu0 }
 0x123   :  { %v144_v7 = vadd.f32 %v140_v6, %v71_v5  ;;  %v360_v8 = vpop.f32.mrb[1].mxu0 }
 0x125   :  { %146 = vst.msk [vmem:[#allocation2] sm:$0xff] %vm69_vm0, %v144_v7 }
 0x12c   :  { %v150_v9 = vld [vmem:[#allocation2] sm:$0xff] }
 0x12d   :  { %v153_v10 = vsel %vm69_vm0, %v150_v9, -inf }
 0x12e   :  { %172 = vmax.xlane.f32.xlu0 %v153_v10  ;;  %v154_v11 = vrot.slane %v153_v10, 4 }
 0x130   :  { %v155_v12 = vmax.f32 %v153_v10, %v154_v11 }
 0x132   :  { %v156_v13 = vrot.slane %v155_v12, 2 }
 0x134   :  { %v157_v14 = vmax.f32 %v155_v12, %v156_v13 }
 0x136   :  { %v158_v15 = vrot.slane %v157_v14, 1 }
 0x138   :  { %v159_v16 = vmax.f32 %v157_v14, %v158_v15 }
 0x13a   :  { %v160_v17 = vsub.f32 %v150_v9, %v159_v16 }
 0x13c   :  { %v161_v18 = vmul.f32 1.442695, %v160_v17 }
 0x13e   :  { %382 = vpow2.f32 %v161_v18 }
 0x148   :  { %v383_v19 = vpop.eup %382 }
 0x149   :  { %v163_v20 = vsel %vm69_vm0, %v383_v19, 0.0 }
 0x14a   :  { %v164_v21 = vrot.slane %v163_v20, 4 }
 0x14c   :  { %v165_v22 = vadd.f32 %v164_v21, %v163_v20 }
 0x14e   :  { %v166_v23 = vrot.slane %v165_v22, 2 }
 0x150   :  { %v167_v24 = vadd.f32 %v166_v23, %v165_v22 }
 0x152   :  { %v168_v25 = vrot.slane %v167_v24, 1 }
 0x154   :  { %v169_v26 = vadd.f32 %v168_v25, %v167_v24 }
 0x156   :  { %384 = vrcp.f32 %v169_v26 }
 0x15d   :  { %v219_v38 = vpop.xlane.xlu1 %218 }
 0x160   :  { %v385_v27 = vpop.eup %384 }
 0x161   :  { %v171_v28 = vmul.f32 %v385_v27, %v383_v19 }
 0x163   :  { %362 = vmatpush3.xpose.msk.msra.mxu1 %vm69_vm0, %v171_v28 }
 0x1bb   :  { %v173_v33 = vpop.xlane.xlu0 %172 }
 0x1bc   :  { %v174_v34 = vsub.f32 %v150_v9, %v173_v33 }
 0x1be   :  { %v175_v35 = vmul.f32 1.442695, %v174_v34 }
 0x1c0   :  { %386 = vpow2.f32 %v175_v35 }
 0x1c1   :  { %388 = vlog2.f32 %v219_v38 }
 0x1ca   :  { %v387_v36 = vpop.eup %386 }
 0x1cb   :  { %v177_v37 = vsel %vm69_vm0, %v387_v36, 0.0  ;;  %v389_v39 = vpop.eup %388 }
 0x1cc   :  { %178 = vadd.xlane.f32.xlu0 %v177_v37  ;;  %v223_v40 = vmul.f32 0.6931472, %v389_v39 }
 0x1ce   :  { %v225_v41 = vsel %vm224_vm3, %v223_v40, 0.0 }
 0x1d0   :  { %226 = vadd.xlane.f32.xlu0 %v225_v41 }
 0x259   :  { %v179_v42 = vpop.xlane.xlu0 %178 }
 0x25a   :  { %390 = vrcp.f32 %v179_v42 }
 0x25d   :  { %v227_v59 = vpop.xlane.xlu0 %226 }
 0x25e   :  { %v228_v60 = vrot.slane %v227_v59, 4 }
 0x260   :  { %v229_v61 = vadd.f32 %v228_v60, %v227_v59 }
 0x262   :  { %v230_v62 = vrot.slane %v229_v61, 2 }
 0x264   :  { %v391_v43 = vpop.eup %390  ;;  %v231_v1 = vadd.f32 %v230_v62, %v229_v61 }
 0x265   :  { %v181_v44 = vmul.f32 %v391_v43, %v387_v36 }
 0x266   :  { %v232_v4 = vrot.slane %v231_v1, 1 }
 0x267   :  { %v182_v45 = vsel %vm69_vm0, %v181_v44, 0.0  ;;  %364 = vmatmul.mubr.msk.f32.vlgmr.msra.gmra.mrb[0].mxu1 %vm69_vm0, %v181_v44 }
 0x268   :  { %v183_v46 = vrot.slane %v182_v45, 4  ;;  %v233_v7 = vadd.f32 %v232_v4, %v231_v1 }
 0x26a   :  { %v184_v47 = vadd.f32 %v183_v46, %v182_v45 }
 0x26c   :  { %v185_v48 = vrot.slane %v184_v47, 2 }
 0x26e   :  { %v186_v49 = vadd.f32 %v185_v48, %v184_v47 }
 0x270   :  { %v187_v50 = vrot.slane %v186_v49, 1 }
 0x272   :  { %v188_v51 = vadd.f32 %v187_v50, %v186_v49 }
 0x274   :  { %v190_v52 = vmul.f32 0.125, %v188_v51 }
 0x276   :  { %v191_v53 = vadd.f32 1e-08, %v190_v52 }
 0x278   :  { %392 = vlog2.f32 %v191_v53 }
 0x279   :  { %394 = vrcp.f32 %v219_v38 }
 0x282   :  { %v393_v54 = vpop.eup %392 }
 0x283   :  { %v193_v55 = vmul.f32 0.6931472, %v393_v54  ;;  %v395_v12 = vpop.eup %394 }
 0x284   :  { %v221_v15 = vmul.f32 %v395_v12, %v590_v31 }
 0x285   :  { %v194_v56 = vsub.f32 -2.0794415, %v193_v55 }
 0x287   :  { %v195_v57 = vmul.f32 0.125, %v194_v56 }
 0x289   :  { %v197_v58 = vsel %vm196_vm4, %v195_v57, 0.0 }
 0x28a   :  { %198 = vadd.xlane.f32.xlu0 %v197_v58 }
 0x317   :  { %v199_v63 = vpop.xlane.xlu0 %198 }
 0x318   :  { %v200_v0 = vrot.slane %v199_v63, 4 }
 0x31a   :  { %v201_v2 = vadd.f32 %v200_v0, %v199_v63 }
 0x31c   :  { %v202_v3 = vrot.slane %v201_v2, 2 }
 0x31e   :  { %v203_v5 = vadd.f32 %v202_v3, %v201_v2 }
 0x320   :  { %v204_v6 = vrot.slane %v203_v5, 1 }
 0x322   :  { %v205_v8 = vadd.f32 %v204_v6, %v203_v5 }
 0x324   :  { %366 = vpush %v205_v8 }
 0x325   :  { %368 = vpush %v233_v7 }
 0x33a   :  { %v308_v9 = vpop.f32.mrb[0].mxu1 }
 0x33b   :  { %v309_v10 = vadd.f32 1e-08, %v308_v9  ;;  %v365_v11 = vpop.f32.mrb[1].mxu1 }
 0x33d   :  { %396 = vlog2.f32 %v309_v10 }
 0x347   :  { %v397_v13 = vpop.eup %396 }
 0x348   :  { %v313_v14 = vmul.f32 0.6931472, %v397_v13 }
 0x34a   :  { %v314_v16 = vmul.f32 %v313_v14, %v221_v15 }
 0x34c   :  { %v315_v17 = vsel %vm69_vm0, %v314_v16, 0.0 }
 0x34d   :  { %316 = vadd.xlane.f32.xlu0 %v315_v17 }
 0x355   :  { %s367_s3 = spop %366 }
 0x356   :  { %s369_s9 = spop %368 }
 0x357   :  { %s235_s10 = ssub.f32 0.0, %s369_s9 }
 0x3da   :  { %v317_v18 = vpop.xlane.xlu0 %316 }
 0x3db   :  { %v318_v19 = vrot.slane %v317_v18, 4 }
 0x3dd   :  { %v319_v20 = vadd.f32 %v318_v19, %v317_v18 }
 0x3df   :  { %v320_v21 = vrot.slane %v319_v20, 2 }
 0x3e1   :  { %v321_v22 = vadd.f32 %v320_v21, %v319_v20 }
 0x3e3   :  { %v322_v23 = vrot.slane %v321_v22, 1 }
 0x3e5   :  { %v323_v24 = vadd.f32 %v322_v23, %v321_v22 }
 0x3e7   :  { %370 = vpush %v323_v24 }
 0x418   :  { %s371_s1 = spop %370 }
 0x419   :  { %s325_s11 = ssub.f32 %s235_s10, %s371_s1 }
 0x41b   :  { %s328_s12 = smul.f32 0.125, %s325_s11 }
 0x41d   :  { %s329_s13 = sadd.f32 %s367_s3, %s328_s12 }
 0x41f   :  { %331 = sst [smem:[#allocation11]] %s329_s13 }
 0x420   :  { %495 = shalt.err (!%p492_p6)
}
 0x421   :  { %s511_s22 = smov [#allocation11]  }
 0x422   :  { %339 = dma.smem_to_hbm %s511_s22, 16, %s615_s4, [#allocation5]  }
 0x423   :  { %502 = dma.done.wait [#allocation5], 16  }
 0x424   :  { %503 = vsyncadd [#allocation5], 4294967280 }
 0x425   :  { %343 = sfence }
 0x426   :  { %344 = vsyncpa [#allocation4], 1 }
 0x427   :  { %345 = vsyncpa [#allocation7], 1 }
 0x428   :  { %346 = vsyncpa [#allocation10], 1 }
 0x429   :  { %347 = vsyncpa [#allocation5], 1 }

</bundles_post_ra>
